<compile_context>
chip_gen: v5e
topology: v5e:2x2
jax: 0.10.0
libtpu: 0.0.40
codegen_flags: <defaults>
</compile_context>

<pallas_src>
import functools

import jax
import jax.numpy as jnp
import numpy as np
from jax.experimental import pallas as pl
from jax.experimental.pallas import tpu as pltpu


def _rup(n, m):
    return ((n + m - 1) // m) * m


# ---------------------------------------------------------------------------
# Kernel
# ---------------------------------------------------------------------------
def mfh_kernel(x0_ref, x1_ref,
               w0_ref, b0_ref,       # packed projections for input 0, this mm tile
               w1_ref, b1_ref,       # packed projections for input 1, this mm tile
               wout_ref, bout_ref,   # packed linear_out rows for this mm tile
               out_ref,
               acc_ref,              # [TM, out_p] f32 accumulator (VMEM scratch)
               *, tn, factor):
    j = pl.program_id(1)             # mm-tile index (last, "arbitrary" axis)

    @pl.when(j == 0)
    def _():
        acc_ref[...] = jnp.zeros_like(acc_ref)

    # One fused projection matmul per input for this mm tile (MXU), relu.
    # Column layout of the 2*factor*tn block:
    #   [proj0 f=0 | ... | proj0 f=factor-1 | proj1 f=0 | ... | proj1 f=factor-1]
    h0 = jnp.maximum(
        jnp.dot(x0_ref[...], w0_ref[...], preferred_element_type=jnp.float32)
        + b0_ref[...], 0.0)
    h1 = jnp.maximum(
        jnp.dot(x1_ref[...], w1_ref[...], preferred_element_type=jnp.float32)
        + b1_ref[...], 0.0)

    # Slab-fused pooling: pooling members sit tn lanes apart -> pure VPU adds.
    ft = factor * tn
    z0 = None
    z1 = None
    for f in range(factor):
        s0 = h0[:, f * tn:(f + 1) * tn] * h1[:, f * tn:(f + 1) * tn]
        s1 = (h0[:, ft + f * tn:ft + (f + 1) * tn]
              * h1[:, ft + f * tn:ft + (f + 1) * tn]
              * s0)
        z0 = s0 if z0 is None else z0 + s0
        z1 = s1 if z1 is None else z1 + s1

    # linear_out contribution of this mm tile: no concat, two dots against the
    # two row halves of the packed Wout block; accumulate in f32 scratch.
    acc_ref[...] += (
        jnp.dot(z0.astype(wout_ref.dtype), wout_ref[0:tn, :],
                preferred_element_type=jnp.float32)
        + jnp.dot(z1.astype(wout_ref.dtype), wout_ref[tn:2 * tn, :],
                  preferred_element_type=jnp.float32))

    @pl.when(j == pl.num_programs(1) - 1)
    def _():
        out_ref[...] = jnp.maximum(acc_ref[...] + bout_ref[...],
                                   0.0).astype(out_ref.dtype)


# ---------------------------------------------------------------------------
# One-time parameter packing (run at parameter-load time, NOT per call)
# ---------------------------------------------------------------------------
def prepare_mfh_params(params, *, mm_dim, factor, output_dim, tn=128,
                       compute_dtype=jnp.float32):
    """Permute / pad / repack MFH weights for the tiled kernel.

    Layout per input a in {0, 1}:
      packed column  j*(2*factor*tn) + p*(factor*tn) + f*tn + t
        <- projection p (linear{a}_0 if p==0 else linear{a}_1),
           original output column (j*tn + t)*factor + f
      i.e. for mm tile j, the `factor` pooling members of group g = j*tn+t are
      tn lanes apart, and both projections are contiguous in the same block.
    Wout rows are repacked per mm tile as [z0 rows(tn) ; z1 rows(tn)].
    """
    assert tn % 128 == 0, "mm tile must be a multiple of 128 lanes"
    w00, b00, w10, b10, w01, b01, w11, b11, wout, bout = params
    MF = mm_dim * factor
    mm_pad = _rup(mm_dim, tn)
    n_tiles = mm_pad // tn
    MFp = mm_pad * factor
    out_p = _rup(output_dim, 128)

    # permutation (numpy, trace-free): new packed column -> source column in
    # the concatenated [proj0 | proj1] (each padded to MFp columns).
    j = np.arange(n_tiles)[:, None, None, None]
    p = np.arange(2)[None, :, None, None]
    f = np.arange(factor)[None, None, :, None]
    t = np.arange(tn)[None, None, None, :]
    src = (p * MFp + (j * tn + t) * factor + f).reshape(-1)

    def pack_input(w_a, b_a, w_b, b_b):
        in_dim = w_a.shape[0]
        in_p = _rup(in_dim, 128)
        pad_w = lambda w: jnp.pad(w, ((0, in_p - in_dim), (0, MFp - MF)))
        pad_b = lambda b: jnp.pad(b, ((0, 0), (0, MFp - MF)))
        wcat = jnp.concatenate([pad_w(w_a), pad_w(w_b)], axis=1)   # [in_p, 2*MFp]
        bcat = jnp.concatenate([pad_b(b_a), pad_b(b_b)], axis=1)   # [1, 2*MFp]
        return wcat[:, src].astype(compute_dtype), bcat[:, src].astype(jnp.float32)

    w0, b0 = pack_input(w00, b00, w01, b01)   # input 0: linear0_0 | linear0_1
    w1, b1 = pack_input(w10, b10, w11, b11)   # input 1: linear1_0 | linear1_1

    # Wout: rows [0, mm_dim) feed z0, rows [mm_dim, 2*mm_dim) feed z1.
    wz0 = jnp.pad(wout[:mm_dim], ((0, mm_pad - mm_dim), (0, out_p - output_dim)))
    wz1 = jnp.pad(wout[mm_dim:], ((0, mm_pad - mm_dim), (0, out_p - output_dim)))
    wout_packed = jnp.concatenate(
        [wz0.reshape(n_tiles, tn, out_p), wz1.reshape(n_tiles, tn, out_p)],
        axis=1).reshape(n_tiles * 2 * tn, out_p).astype(compute_dtype)
    bout_packed = jnp.pad(bout, ((0, 0), (0, out_p - output_dim))
                          ).astype(jnp.float32)

    return (w0, b0, w1, b1, wout_packed, bout_packed)


# ---------------------------------------------------------------------------
# Forward wrapper (the hot path)
# ---------------------------------------------------------------------------
def mfh_pallas(x0, x1, packed, *, factor, output_dim, tn=128):
    w0, b0, w1, b1, wout_p, bout_p = packed
    B = x0.shape[0]
    in0_p, in1_p = w0.shape[0], w1.shape[0]
    out_p = wout_p.shape[1]
    mm_pad = wout_p.shape[0] // 2
    n_mm = mm_pad // tn
    wcols = 2 * factor * tn
    cdt = w0.dtype

    # lane-pad + cast activations (padded cols meet zero weight rows: exact)
    x0p = jnp.pad(x0, ((0, 0), (0, in0_p - x0.shape[1]))).astype(cdt)
    x1p = jnp.pad(x1, ((0, 0), (0, in1_p - x1.shape[1]))).astype(cdt)

    # batch tiling; guarantee >= 2 batch tiles so both v7x TensorCores get work
    if B >= 256:
        tm = 128
    else:
        tm = max(8, _rup((B + 1) // 2, 8))
    bp = _rup(B, tm)
    if bp // tm < 2:
        bp += tm
    n_bt = bp // tm
    x0p = jnp.pad(x0p, ((0, bp - B), (0, 0)))
    x1p = jnp.pad(x1p, ((0, bp - B), (0, 0)))

    # advisory cost hint for the XLA scheduler
    flops = (2 * bp * (in0_p + in1_p) * (2 * factor * mm_pad)
             + 2 * bp * (2 * mm_pad) * out_p)
    w_bytes = sum(int(a.size) * a.dtype.itemsize
                  for a in (w0, b0, w1, b1, wout_p, bout_p))
    io_bytes = (int(x0p.size) * x0p.dtype.itemsize
                + int(x1p.size) * x1p.dtype.itemsize
                + bp * out_p * 4)
    cost = pl.CostEstimate(flops=int(flops), transcendentals=0,
                           bytes_accessed=int(io_bytes + n_bt * w_bytes))

    kernel = functools.partial(mfh_kernel, tn=tn, factor=factor)

    out = pl.pallas_call(
        kernel,
        out_shape=jax.ShapeDtypeStruct((bp, out_p), jnp.float32),
        grid=(n_bt, n_mm),
        in_specs=[
            pl.BlockSpec((tm, in0_p), lambda i, j: (i, 0)),      # x0 batch tile
            pl.BlockSpec((tm, in1_p), lambda i, j: (i, 0)),      # x1 batch tile
            pl.BlockSpec((in0_p, wcols), lambda i, j: (0, j)),   # W(input0), mm tile
            pl.BlockSpec((1, wcols), lambda i, j: (0, j)),       # b(input0), mm tile
            pl.BlockSpec((in1_p, wcols), lambda i, j: (0, j)),   # W(input1), mm tile
            pl.BlockSpec((1, wcols), lambda i, j: (0, j)),       # b(input1), mm tile
            pl.BlockSpec((2 * tn, out_p), lambda i, j: (j, 0)),  # Wout rows, mm tile
            pl.BlockSpec((1, out_p), lambda i, j: (0, 0)),       # bout
        ],
        out_specs=pl.BlockSpec((tm, out_p), lambda i, j: (i, 0)),
        scratch_shapes=[pltpu.VMEM((tm, out_p), jnp.float32)],
        compiler_params=pltpu.CompilerParams(
            dimension_semantics=("parallel", "arbitrary"),
            vmem_limit_bytes=48 * 1024 * 1024),
        cost_estimate=cost,
    )(x0p, x1p, w0, b0, w1, b1, wout_p, bout_p)

    return out[:B, :output_dim]


# ---------------------------------------------------------------------------
# Plain-JAX reference (mirrors the PyTorch forward exactly)
# ---------------------------------------------------------------------------
def mfh_reference(x0, x1, params, mm_dim, factor, output_dim):
    w00, b00, w10, b10, w01, b01, w11, b11, wout, bout = params
    B = x0.shape[0]
    h00 = jax.nn.relu(x0 @ w00 + b00)
    h10 = jax.nn.relu(x1 @ w10 + b10)
    z0_skip = h00 * h10
    z0 = z0_skip.reshape(B, mm_dim, factor).sum(2)
    h01 = jax.nn.relu(x0 @ w01 + b01)
    h11 = jax.nn.relu(x1 @ w11 + b11)
    z1 = (h01 * h11 * z0_skip).reshape(B, mm_dim, factor).sum(2)
    z = jnp.concatenate([z0, z1], axis=-1)
    return jax.nn.relu(z @ wout + bout)


def init_params(key, input_dims, mm_dim, factor, output_dim):
    """Deterministic init, nn.Linear-style uniform(+-1/sqrt(fan_in)).
    Weights stored as [in, out] (pre-transposed); biases as [1, out]."""
    MF = mm_dim * factor
    shapes = [
        (input_dims[0], MF), (1, MF),               # linear0_0
        (input_dims[1], MF), (1, MF),               # linear1_0
        (input_dims[0], MF), (1, MF),               # linear0_1
        (input_dims[1], MF), (1, MF),               # linear1_1
        (2 * mm_dim, output_dim), (1, output_dim),  # linear_out
    ]
    keys = jax.random.split(key, len(shapes))
    params = []
    for i, shp in enumerate(shapes):
        fan_in = shp[0] if shp[0] != 1 else shapes[i - 1][0]
        bound = 1.0 / np.sqrt(fan_in)
        params.append(jax.random.uniform(keys[i], shp, jnp.float32, -bound, bound))
    return tuple(params)


if __name__ == "__main__":
    # small, MFH-consistent shapes; mm_dim deliberately NOT a multiple of 128
    # to exercise the mm-padding path, and > tn to exercise mm-axis tiling.
    input_dims = (64, 48)
    mm_dim = 200
    factor = 2
    output_dim = 64
    B = 8
    TN = 128

    key = jax.random.PRNGKey(0)
    kx0, kx1, kp = jax.random.split(key, 3)
    x0 = jax.random.normal(kx0, (B, input_dims[0]), jnp.float32)
    x1 = jax.random.normal(kx1, (B, input_dims[1]), jnp.float32)
    params = init_params(kp, input_dims, mm_dim, factor, output_dim)

    # one-time weight packing (parameter-load time, outside the hot path)
    packed = prepare_mfh_params(params, mm_dim=mm_dim, factor=factor,
                                output_dim=output_dim, tn=TN,
                                compute_dtype=jnp.float32)
    packed = jax.tree_util.tree_map(jax.block_until_ready, packed)

    mfh = jax.jit(functools.partial(
        mfh_pallas, factor=factor, output_dim=output_dim, tn=TN))

    out = mfh(x0, x1, packed)
    out = jax.block_until_ready(out)

    ref = mfh_reference(x0, x1, params, mm_dim, factor, output_dim)
    np.testing.assert_allclose(np.asarray(out), np.asarray(ref),
                               rtol=5e-5, atol=1e-5)

    print("KERNEL_OK")
</pallas_src>

<mosaic_0001>
module attributes {stable_mosaic.version = 11 : i64} {
  func.func @mfh_kernel(%arg0: i32, %arg1: i32, %arg2: memref<8x128xf32, #tpu.memory_space<vmem>>, %arg3: memref<8x128xf32, #tpu.memory_space<vmem>>, %arg4: memref<128x512xf32, #tpu.memory_space<vmem>>, %arg5: memref<1x512xf32, #tpu.memory_space<vmem>>, %arg6: memref<128x512xf32, #tpu.memory_space<vmem>>, %arg7: memref<1x512xf32, #tpu.memory_space<vmem>>, %arg8: memref<256x128xf32, #tpu.memory_space<vmem>>, %arg9: memref<1x128xf32, #tpu.memory_space<vmem>>, %arg10: memref<8x128xf32, #tpu.memory_space<vmem>>, %arg11: memref<8x128xf32, #tpu.memory_space<vmem>>) attributes {dimension_semantics = [#tpu.dimension_semantics<parallel>, #tpu.dimension_semantics<arbitrary>], iteration_bounds = array<i64: 2, 2>, scalar_prefetch = 0 : i64, scratch_operands = 1 : i64, tpu.core_type = #tpu.core_type<tc>, window_params = [{transform_indices = @transform_0, window_bounds = array<i64: 8, 128>}, {transform_indices = @transform_1, window_bounds = array<i64: 8, 128>}, {transform_indices = @transform_2, window_bounds = array<i64: 128, 512>}, {transform_indices = @transform_3, window_bounds = array<i64: 1, 512>}, {transform_indices = @transform_4, window_bounds = array<i64: 128, 512>}, {transform_indices = @transform_5, window_bounds = array<i64: 1, 512>}, {transform_indices = @transform_6, window_bounds = array<i64: 256, 128>}, {pipeline_mode = #tpu.pipeline_mode<synchronous>, transform_indices = @transform_7, window_bounds = array<i64: 1, 128>}, {transform_indices = @transform_8, window_bounds = array<i64: 8, 128>}]} {
    %c0_i32 = arith.constant 0 : i32
    %0 = arith.cmpi eq, %arg1, %c0_i32 : i32
    %1 = arith.extui %0 : i1 to i32
    %c0_i32_0 = arith.constant 0 : i32
    %2 = arith.cmpi ne, %1, %c0_i32_0 : i32
    scf.if %2 {
      %cst_25 = arith.constant 0.000000e+00 : f32
      %46 = vector.broadcast %cst_25 : f32 to vector<8x128xf32>
      %c0_26 = arith.constant 0 : index
      %c0_27 = arith.constant 0 : index
      %47 = vector.load %arg11[%c0_26, %c0_27] : memref<8x128xf32, #tpu.memory_space<vmem>>, vector<8x128xf32>
      tpu.vector_store %arg11[%c0_26, %c0_27], %46 {strides = array<i32>} : memref<8x128xf32, #tpu.memory_space<vmem>>, vector<8x128xf32>,
    } else {
    }
    %c0 = arith.constant 0 : index
    %c0_1 = arith.constant 0 : index
    %3 = vector.load %arg2[%c0, %c0_1] : memref<8x128xf32, #tpu.memory_space<vmem>>, vector<8x128xf32>
    %c0_2 = arith.constant 0 : index
    %c0_3 = arith.constant 0 : index
    %4 = vector.load %arg4[%c0_2, %c0_3] : memref<128x512xf32, #tpu.memory_space<vmem>>, vector<128x512xf32>
    %cst = arith.constant dense<0.000000e+00> : vector<8x512xf32>
    %5 = tpu.matmul %3, %4, %cst {dimension_numbers = #tpu.dot_dimension_numbers<[1], [0], [0], [1], [0, 0, 1, 1], [], []>} : vector<8x128xf32>, vector<128x512xf32>, vector<8x512xf32> -> vector<8x512xf32>
    %c0_4 = arith.constant 0 : index
    %c0_5 = arith.constant 0 : index
    %6 = vector.load %arg5[%c0_4, %c0_5] : memref<1x512xf32, #tpu.memory_space<vmem>>, vector<1x512xf32>
    %7 = vector.broadcast %6 : vector<1x512xf32> to vector<8x512xf32>
    %8 = arith.addf %5, %7 : vector<8x512xf32>
    %cst_6 = arith.constant 0.000000e+00 : f32
    %9 = vector.broadcast %cst_6 : f32 to vector<8x512xf32>
    %10 = arith.maximumf %8, %9 : vector<8x512xf32>
    %c0_7 = arith.constant 0 : index
    %c0_8 = arith.constant 0 : index
    %11 = vector.load %arg3[%c0_7, %c0_8] : memref<8x128xf32, #tpu.memory_space<vmem>>, vector<8x128xf32>
    %c0_9 = arith.constant 0 : index
    %c0_10 = arith.constant 0 : index
    %12 = vector.load %arg6[%c0_9, %c0_10] : memref<128x512xf32, #tpu.memory_space<vmem>>, vector<128x512xf32>
    %cst_11 = arith.constant dense<0.000000e+00> : vector<8x512xf32>
    %13 = tpu.matmul %11, %12, %cst_11 {dimension_numbers = #tpu.dot_dimension_numbers<[1], [0], [0], [1], [0, 0, 1, 1], [], []>} : vector<8x128xf32>, vector<128x512xf32>, vector<8x512xf32> -> vector<8x512xf32>
    %c0_12 = arith.constant 0 : index
    %c0_13 = arith.constant 0 : index
    %14 = vector.load %arg7[%c0_12, %c0_13] : memref<1x512xf32, #tpu.memory_space<vmem>>, vector<1x512xf32>
    %15 = vector.broadcast %14 : vector<1x512xf32> to vector<8x512xf32>
    %16 = arith.addf %13, %15 : vector<8x512xf32>
    %cst_14 = arith.constant 0.000000e+00 : f32
    %17 = vector.broadcast %cst_14 : f32 to vector<8x512xf32>
    %18 = arith.maximumf %16, %17 : vector<8x512xf32>
    %19 = vector.extract_strided_slice %10 {offsets = [0, 0], sizes = [8, 128], strides = [1, 1]} : vector<8x512xf32> to vector<8x128xf32>
    %20 = vector.extract_strided_slice %18 {offsets = [0, 0], sizes = [8, 128], strides = [1, 1]} : vector<8x512xf32> to vector<8x128xf32>
    %21 = arith.mulf %19, %20 : vector<8x128xf32>
    %22 = vector.extract_strided_slice %10 {offsets = [0, 256], sizes = [8, 128], strides = [1, 1]} : vector<8x512xf32> to vector<8x128xf32>
    %23 = vector.extract_strided_slice %18 {offsets = [0, 256], sizes = [8, 128], strides = [1, 1]} : vector<8x512xf32> to vector<8x128xf32>
    %24 = arith.mulf %22, %23 : vector<8x128xf32>
    %25 = arith.mulf %24, %21 : vector<8x128xf32>
    %26 = vector.extract_strided_slice %10 {offsets = [0, 128], sizes = [8, 128], strides = [1, 1]} : vector<8x512xf32> to vector<8x128xf32>
    %27 = vector.extract_strided_slice %18 {offsets = [0, 128], sizes = [8, 128], strides = [1, 1]} : vector<8x512xf32> to vector<8x128xf32>
    %28 = arith.mulf %26, %27 : vector<8x128xf32>
    %29 = vector.extract_strided_slice %10 {offsets = [0, 384], sizes = [8, 128], strides = [1, 1]} : vector<8x512xf32> to vector<8x128xf32>
    %30 = vector.extract_strided_slice %18 {offsets = [0, 384], sizes = [8, 128], strides = [1, 1]} : vector<8x512xf32> to vector<8x128xf32>
    %31 = arith.mulf %29, %30 : vector<8x128xf32>
    %32 = arith.mulf %31, %28 : vector<8x128xf32>
    %33 = arith.addf %21, %28 : vector<8x128xf32>
    %34 = arith.addf %25, %32 : vector<8x128xf32>
    %c0_15 = arith.constant 0 : index
    %c0_16 = arith.constant 0 : index
    %35 = vector.load %arg11[%c0_15, %c0_16] : memref<8x128xf32, #tpu.memory_space<vmem>>, vector<8x128xf32>
    %c0_17 = arith.constant 0 : index
    %c0_18 = arith.constant 0 : index
    %36 = vector.load %arg8[%c0_17, %c0_18] : memref<256x128xf32, #tpu.memory_space<vmem>>, vector<128x128xf32>
    %cst_19 = arith.constant dense<0.000000e+00> : vector<8x128xf32>
    %37 = tpu.matmul %33, %36, %cst_19 {dimension_numbers = #tpu.dot_dimension_numbers<[1], [0], [0], [1], [0, 0, 1, 1], [], []>} : vector<8x128xf32>, vector<128x128xf32>, vector<8x128xf32> -> vector<8x128xf32>
    %c128 = arith.constant 128 : index
    %c0_20 = arith.constant 0 : index
    %38 = vector.load %arg8[%c128, %c0_20] : memref<256x128xf32, #tpu.memory_space<vmem>>, vector<128x128xf32>
    %cst_21 = arith.constant dense<0.000000e+00> : vector<8x128xf32>
    %39 = tpu.matmul %34, %38, %cst_21 {dimension_numbers = #tpu.dot_dimension_numbers<[1], [0], [0], [1], [0, 0, 1, 1], [], []>} : vector<8x128xf32>, vector<128x128xf32>, vector<8x128xf32> -> vector<8x128xf32>
    %40 = arith.addf %37, %39 : vector<8x128xf32>
    %41 = arith.addf %35, %40 : vector<8x128xf32>
    %c0_22 = arith.constant 0 : index
    %c0_23 = arith.constant 0 : index
    %42 = vector.load %arg11[%c0_22, %c0_23] : memref<8x128xf32, #tpu.memory_space<vmem>>, vector<8x128xf32>
    tpu.vector_store %arg11[%c0_22, %c0_23], %41 {strides = array<i32>} : memref<8x128xf32, #tpu.memory_space<vmem>>, vector<8x128xf32>,
    %c1_i32 = arith.constant 1 : i32
    %43 = arith.cmpi eq, %arg1, %c1_i32 : i32
    %44 = arith.extui %43 : i1 to i32
    %c0_i32_24 = arith.constant 0 : i32
    %45 = arith.cmpi ne, %44, %c0_i32_24 : i32
    scf.if %45 {
      %c0_25 = arith.constant 0 : index
      %c0_26 = arith.constant 0 : index
      %46 = vector.load %arg11[%c0_25, %c0_26] : memref<8x128xf32, #tpu.memory_space<vmem>>, vector<8x128xf32>
      %c0_27 = arith.constant 0 : index
      %c0_28 = arith.constant 0 : index
      %47 = vector.load %arg9[%c0_27, %c0_28] : memref<1x128xf32, #tpu.memory_space<vmem>>, vector<1x128xf32>
      %48 = vector.broadcast %47 : vector<1x128xf32> to vector<8x128xf32>
      %49 = arith.addf %46, %48 : vector<8x128xf32>
      %cst_29 = arith.constant 0.000000e+00 : f32
      %50 = vector.broadcast %cst_29 : f32 to vector<8x128xf32>
      %51 = arith.maximumf %49, %50 : vector<8x128xf32>
      %c0_30 = arith.constant 0 : index
      %c0_31 = arith.constant 0 : index
      %52 = vector.load %arg10[%c0_30, %c0_31] : memref<8x128xf32, #tpu.memory_space<vmem>>, vector<8x128xf32>
      tpu.vector_store %arg10[%c0_30, %c0_31], %51 {strides = array<i32>} : memref<8x128xf32, #tpu.memory_space<vmem>>, vector<8x128xf32>,
    } else {
    }
    return
  }
  func.func @transform_0(%arg0: i32, %arg1: i32) -> (i32, i32) {
    %c0_i32 = arith.constant 0 : i32
    %c0_i32_0 = arith.constant 0 : i32
    return %arg0, %c0_i32 : i32, i32
  }
  func.func @transform_1(%arg0: i32, %arg1: i32) -> (i32, i32) {
    %c0_i32 = arith.constant 0 : i32
    %c0_i32_0 = arith.constant 0 : i32
    return %arg0, %c0_i32 : i32, i32
  }
  func.func @transform_2(%arg0: i32, %arg1: i32) -> (i32, i32) {
    %c0_i32 = arith.constant 0 : i32
    %c0_i32_0 = arith.constant 0 : i32
    return %c0_i32, %arg1 : i32, i32
  }
  func.func @transform_3(%arg0: i32, %arg1: i32) -> (i32, i32) {
    %c0_i32 = arith.constant 0 : i32
    %c0_i32_0 = arith.constant 0 : i32
    return %c0_i32, %arg1 : i32, i32
  }
  func.func @transform_4(%arg0: i32, %arg1: i32) -> (i32, i32) {
    %c0_i32 = arith.constant 0 : i32
    %c0_i32_0 = arith.constant 0 : i32
    return %c0_i32, %arg1 : i32, i32
  }
  func.func @transform_5(%arg0: i32, %arg1: i32) -> (i32, i32) {
    %c0_i32 = arith.constant 0 : i32
    %c0_i32_0 = arith.constant 0 : i32
    return %c0_i32, %arg1 : i32, i32
  }
  func.func @transform_6(%arg0: i32, %arg1: i32) -> (i32, i32) {
    %c0_i32 = arith.constant 0 : i32
    %c0_i32_0 = arith.constant 0 : i32
    return %arg1, %c0_i32 : i32, i32
  }
  func.func @transform_7(%arg0: i32, %arg1: i32) -> (i32, i32) {
    %c0_i32 = arith.constant 0 : i32
    %c0_i32_0 = arith.constant 0 : i32
    %c0_i32_1 = arith.constant 0 : i32
    return %c0_i32, %c0_i32_0 : i32, i32
  }
  func.func @transform_8(%arg0: i32, %arg1: i32) -> (i32, i32) {
    %c0_i32 = arith.constant 0 : i32
    %c0_i32_0 = arith.constant 0 : i32
    return %arg0, %c0_i32 : i32, i32
  }
}

</mosaic_0001>

<bundles_post_ra>
// kernel: mfh_pallas.1
= control target key start
LH: loop header
LB: loop body
LE: loop exit
PB: predicated region body
PF: predicated region fallthrough
CT: control target
= control target key end

     0   :  { %s1764_s0 = inlined_call_operand.vmem [shape: f32[16,128], index: 0, kind: input, shape index: {}]   ;;  %s1765_s1 = inlined_call_operand.vmem [shape: f32[16,128], index: 1, kind: input, shape index: {}]   ;;  %s1766_s2 = inlined_call_operand.hbm [shape: f32[128,1024], index: 2, kind: input, shape index: {}]   ;;  %s1767_s3 = inlined_call_operand.vmem [shape: f32[1,1024], index: 3, kind: input, shape index: {}]   ;;  %s1768_s4 = inlined_call_operand.hbm [shape: f32[128,1024], index: 4, kind: input, shape index: {}]   ;;  %s1769_s5 = inlined_call_operand.vmem [shape: f32[1,1024], index: 5, kind: input, shape index: {}]   ;;  %s1770_s6 = inlined_call_operand.hbm [shape: f32[512,128], index: 6, kind: input, shape index: {}]   ;;  %s1771_s7 = inlined_call_operand.vmem [shape: f32[1,128], index: 7, kind: input, shape index: {}]   ;;  %s1772_s8 = inlined_call_operand.vmem [shape: f32[16,128], index: 8, kind: output, shape index: {}]  }
   0x1   :  { %1777 = sst [smem:[#allocation15_spill]] %s1764_s0 }
   0x2   :  { %1778 = sst [smem:[#allocation16_spill]] %s1765_s1 }
   0x3   :  { %1779 = sst [smem:[#allocation17_spill]] %s1767_s3 }
   0x4   :  { %1780 = sst [smem:[#allocation18_spill]] %s1768_s4 }
   0x5   :  { %1781 = sst [smem:[#allocation19_spill]] %s1769_s5 }
   0x6   :  { %1782 = sst [smem:[#allocation20_spill]] %s1771_s7 }
   0x7   :  { %1783 = sst [smem:[#allocation21_spill]] %s1772_s8 }
   0x8   :  { %13 = vsyncpa [#allocation4], 0 }
   0x9   :  { %15 = vsyncpa [#allocation4 + $0x1], 0 }
   0xa   :  { %16 = vsyncpa [#allocation6], 0 }
   0xb   :  { %18 = vsyncpa [#allocation6 + $0x1], 0  ;;  %s1403_s27 = smov 0   ;;  %s1405_s28 = smov 0  }
   0xc   :  { %s1407_s29 = smov 0   ;;  %s1409_s30 = smov 0  }
   0xd   :  { %s1411_s9 = smov 0   ;;  %s1413_s10 = smov 0  }
   0xe   :  { %s1415_s11 = smov 0   ;;  %s1417_s12 = smov 0  }
   0xf LB: > { %1784 = sst [smem:[#allocation10_spill]] %s1330_s29  ;;  %s1773_s13 = sadd.s32 4294967295, %s1350_s12   ;;  %s1350_s12 = sphi %s1417_s12, %s24_s12   ;;  %s1346_s11 = sphi %s1415_s11, %s1809_s11   ;;  %s1342_s10 = sphi %s1413_s10, %s1813_s10   ;;  %s1338_s9 = sphi %s1411_s9, %s1807_s9   ;;  %s1334_s30 = sphi %s1409_s30, %s1812_s30   ;;  %s1330_s29 = sphi %s1407_s29, %s1806_s29   ;;  %s1326_s28 = sphi %s1405_s28, %s1811_s28   ;;  %s1322_s27 = sphi %s1403_s27, %s1810_s27  }
  0x10   : > { %1785 = sst [smem:[#allocation11_spill]] %s1346_s11  ;;  %s33_s14 = sadd.s32 1, %s1342_s10 }
  0x11   : > { %p34_p0 = scmp.ge.s32.totalorder %s33_s14, 2  ;;  %s36_s15 = sadd.s32 1, %s1346_s11 }
  0x12   : > { %s95_s16 = sadd.s32 1, %s1330_s29  ;;  %p102_p1 = scmp.ne.s32.totalorder %s1330_s29, %s1326_s28 }
  0x13   : > { %s1815_s14 = smov (%p34_p0, %s33_s14), 0  ;;  %s1817_s15 = smov (!%p34_p0, %s36_s15), %s1346_s11 }
  0x14   : > { %1786 = sst [smem:[#allocation12_spill]] %s1815_s14  ;;  %s92_s17 = ssub.s32 %s1342_s10, %s1815_s14 }
  0x15   : > { %p103_p2 = scmp.eq.s32.totalorder %s1350_s12, 0  ;;  %p38_p3 = scmp.ge.s32.totalorder %s1817_s15, 2 }
  0x16   : > { %p93_p4 = scmp.eq.s32.totalorder %s92_s17, 0  ;;  %p108_p6 = scmp.ne.s32.totalorder %s1326_s28, %s1322_s27 }
  0x17   : > { %p104_p5 = por %p103_p2, %p102_p1  ;;  %s1819_s15 = smov (%p38_p3, %s1817_s15), 0 }
  0x18   : > { %1787 = sst [smem:[#allocation13_spill]] %s1819_s15  ;;  %p109_p7 = scmp.eq.s32.totalorder %s1773_s13, 0 }
  0x19   : > { %s1457_s18 = scalar_select %p93_p4, %s1330_s29, %s95_s16  }
  0x1a   : > { %p1118_p8 = scmp.lt.s32.totalorder %s1350_s12, 4  ;;  %s1463_s19 = sand.u32 1, %s1330_s29  }
  0x1b   : > { %1788 = sst [smem:[#allocation14_spill]] %s1457_s18  ;;  %p1465_p9 = por %p109_p7, %p108_p6 }
  0x1c   : > { %s1077_s21 = sshll.u32 %s1463_s19, 9  ;;  %s1099_s22 = sshll.u32 %s1342_s10, 5 }
  0x1d   : > { %p1471_p10 = pnand %p1118_p8, %p104_p5  ;;  %s330_s24 = sand.u32 1, %s1350_s12  }
  0x1e   : > { %s1791_s4 = sld [smem:[#allocation18_spill]]  ;;  %s334_s17 = scalar_lea.vmem [#allocation5], %s1077_s21 }
  0x1f   : > { %s342_s13 = sshll.u32 %s334_s17, 4  ;;  %s1479_s15 = scalar_lea.sflag [#allocation6], %s330_s24  ;;  %s343_s13 = int_to_ptr.vmem [resolvable:$true] %s342_s13 }
  0x20   : > { %s1352_s14 = smov 1024   ;;  %s1353_s11 = smov 512  }
  0x21   : > { %s1354_s18 = smov 32   ;;  %p1086_p11 = scmp.ge.s32.totalorder %s1350_s12, 1 }
  0x22   : > { %p380_p12 = scmp.lt.s32.totalorder %s1350_s12, 5  ;;  %s309_s17 = scalar_lea.hbm %s1766_s2, %s1099_s22 }
  0x23   : > { %s310_s24 = sshll.u32 %s309_s17, 4  ;;  %s301_s7 = scalar_lea.sflag [#allocation4], %s1463_s19  ;;  %s311_s24 = int_to_ptr.hbm [resolvable:$true] %s310_s24 }
  0x24   : > { %s339_s27 = scalar_lea.hbm %s1791_s4, %s1099_s22  ;;  %p1486_p13 = pnand %p1086_p11, %p380_p12 }
  0x25   : > { %s340_s16 = sshll.u32 %s339_s27, 4  ;;  %s304_s4 = scalar_lea.vmem [#allocation3], %s1077_s21  ;;  %s341_s16 = int_to_ptr.hbm [resolvable:$true] %s340_s16 }
  0x26   : > { %1114 = dma.hbm_to_vmem [thread:$0]  (!%p1471_p10), %s341_s16, 8192, %s343_s13, %s1479_s15, %s1352_s14, %s1353_s11, %s1354_s18  }
  0x27   : > { %s312_s29 = sshll.u32 %s304_s4, 4  ;;  %s1083_s13 = sshll.u32 %s1463_s19, 8  ;;  %s313_s29 = int_to_ptr.vmem [resolvable:$true] %s312_s29 }
  0x28   : > { %1111 = dma.hbm_to_vmem [thread:$0]  (!%p1471_p10), %s311_s24, 8192, %s313_s29, %s301_s7, %s1352_s14, %s1353_s11, %s1354_s18  }
  0x29   : > { %s1101_s16 = sshll.u32 %s1342_s10, 8  ;;  %s364_s0 = scalar_lea.vmem [#allocation7], %s1083_s13 }
  0x2a   : > { %s369_s8 = scalar_lea.hbm %s1770_s6, %s1101_s16  ;;  %s372_s26 = sshll.u32 %s364_s0, 4  ;;  %s373_s26 = int_to_ptr.vmem [resolvable:$true] %s372_s26 }
  0x2b   : > { %s370_s1 = sshll.u32 %s369_s8, 4  ;;  %s1355_s21 = smov 128   ;;  %s371_s1 = int_to_ptr.hbm [resolvable:$true] %s370_s1 }
  0x2c   : > { %s1356_s22 = smov 8   ;;  %384 = sbr.rel (%p1486_p13) target bundleno = 422 (0x1a6), region = 52 }
  0x2d   : > { %1117 = dma.hbm_to_vmem [thread:$0]  (!%p1471_p10), %s371_s1, 4096, %s373_s26, %s1479_s15, %s1355_s21, %s1355_s21, %s1356_s22  }
  0x2e   : > { %s386_s4 = sand.u32 (!%p1486_p13), 1, %s1326_s28  }
  0x2f   : > { %s1087_s7 = sshll.u32 (!%p1486_p13), %s386_s4, 9  ;;  %s387_s29 = scalar_lea.sflag (!%p1486_p13), [#allocation4], %s386_s4 }
  0x30   : > { %s1507_s11 = scalar_lea.vmem (!%p1486_p13), [#allocation3], %s1087_s7 }
  0x31   : > { %1313 = dma.done.wait (%p1465_p9), %s387_s29, 8192  }
  0x32   : > { %1315 = vsyncadd (%p1465_p9), %s387_s29, 4294959104  ;;  %s1793_s0 = sadd.s32 4294967295, %s1350_s12   ;;  %s1515_s5 = scalar_lea.vmem [#allocation5], %s1087_s7 }
  0x33   : > { %s396_s3 = sand.u32 1, %s1793_s0  }
  0x34   : > { %s397_s1 = scalar_lea.sflag [#allocation6], %s396_s3 }
  0x35   : > { %1317 = dma.done.wait (%p1465_p9), %s397_s1, 12288  }
  0x36   : > { %1319 = vsyncadd (%p1465_p9), %s397_s1, 4294955008  ;;  %s1089_s8 = sshll.u32 %s386_s4, 8  ;;  %p469_p0 = scmp.lt.s32.totalorder %s1338_s9, 1 }
  0x37   : > { %s1092_s14 = sshll.u32 %s1334_s30, 2  ;;  %s1794_s23 = sld [smem:[#allocation15_spill]] }
  0x38   : > { %s1821_s9 = smov (!%p469_p0, %s1338_s9), 1  ;;  %p479_p1 = scmp.lt.s32.totalorder %s1092_s14, 7 }
  0x39   : > { %s1524_s15 = sshll.u32 %s1821_s9, 3  ;;  %s1795_s17 = sld [smem:[#allocation16_spill]] }
  0x3a   : > { %s1823_s14 = smov (!%p479_p1, %s1092_s14), 7  ;;  %s1796_s26 = sld [smem:[#allocation21_spill]] }
  0x3b   : > { %s1797_s4 = sld [smem:[#allocation17_spill]]  ;;  %s1548_s18 = scalar_lea.vmem [#allocation7], %s1089_s8 }
  0x3c   : > { %s1798_s3 = sld [smem:[#allocation19_spill]]  ;;  %p1095_p2 = scmp.ne.s32.totalorder %s1334_s30, 0 }
  0x3d   : > { %s472_s25 = scalar_lea.vmem %s1794_s23, %s1524_s15 }
  0x3e   : > { %497 = sbr.rel (%p1095_p2) target bundleno = 69 (0x45), region = 68 }
  0x3f   : > { %s476_s24 = scalar_lea.vmem %s1795_s17, %s1524_s15 }
  0x40   : > { %s493_s9 = scalar_lea.vmem %s1796_s26, %s1524_s15 }
  0x41   : > { %s481_s7 = scalar_lea.vmem %s1797_s4, %s1823_s14 }
  0x42   : > { %s487_s1 = scalar_lea.vmem %s1798_s3, %s1823_s14 }
  0x43   : > { %v1357_v0 = vmov 0.0  }
  0x44   : > { %498 = vst [vmem:[#allocation2] sm:$0xff] %v1357_v0 }
  0x45 PF: > { %v560_v1 = vld [vmem:[%s1507_s11 + $0x1e0] sm:$0xff]  ;;  %v561_v2 = vld [vmem:[%s1507_s11 + $0x1e8] sm:$0xff]  ;;  %v562_v3 = vld [vmem:[%s1507_s11 + $0x1f0] sm:$0xff]  ;;  %p1096_p3 = scmp.ne.s32.totalorder %s1334_s30, 1 }
  0x46   : > { %574 = vmatpush.msra.mxu0 %v560_v1  ;;  %594 = vmatpush.msra.mxu1 %v561_v2  ;;  %v563_v4 = vld [vmem:[%s1507_s11 + $0x1f8] sm:$0xff]  ;;  %v556_v5 = vld [vmem:[%s1507_s11 + $0x1c0] sm:$0xff]  ;;  %v557_v6 = vld [vmem:[%s1507_s11 + $0x1c8] sm:$0xff]  ;;  %s1803_s21 = sld [smem:[#allocation20_spill]] (!%p1096_p3) }
  0x47   : > { %614 = vmatpush.msra.mxu2 %v562_v3  ;;  %634 = vmatpush.msra.mxu3 %v563_v4  ;;  %v558_v7 = vld [vmem:[%s1507_s11 + $0x1d0] sm:$0xff]  ;;  %v559_v8 = vld [vmem:[%s1507_s11 + $0x1d8] sm:$0xff]  ;;  %v552_v9 = vld [vmem:[%s1507_s11 + $0x1a0] sm:$0xff] }
  0x48   : > { %575 = vmatpush.msra.mxu0 %v556_v5  ;;  %595 = vmatpush.msra.mxu1 %v557_v6  ;;  %v553_v10 = vld [vmem:[%s1507_s11 + $0x1a8] sm:$0xff]  ;;  %v554_v11 = vld [vmem:[%s1507_s11 + $0x1b0] sm:$0xff]  ;;  %v555_v12 = vld [vmem:[%s1507_s11 + $0x1b8] sm:$0xff] }
  0x49   : > { %615 = vmatpush.msra.mxu2 %v558_v7  ;;  %635 = vmatpush.msra.mxu3 %v559_v8  ;;  %v548_v13 = vld [vmem:[%s1507_s11 + $0x180] sm:$0xff]  ;;  %v549_v14 = vld [vmem:[%s1507_s11 + $0x188] sm:$0xff]  ;;  %v550_v15 = vld [vmem:[%s1507_s11 + $0x190] sm:$0xff] }
  0x4a   : > { %576 = vmatpush.msra.mxu0 %v552_v9  ;;  %596 = vmatpush.msra.mxu1 %v553_v10  ;;  %v551_v16 = vld [vmem:[%s1507_s11 + $0x198] sm:$0xff]  ;;  %v544_v17 = vld [vmem:[%s1507_s11 + $0x160] sm:$0xff]  ;;  %v545_v18 = vld [vmem:[%s1507_s11 + $0x168] sm:$0xff] }
  0x4b   : > { %616 = vmatpush.msra.mxu2 %v554_v11  ;;  %636 = vmatpush.msra.mxu3 %v555_v12  ;;  %v546_v19 = vld [vmem:[%s1507_s11 + $0x170] sm:$0xff]  ;;  %v547_v20 = vld [vmem:[%s1507_s11 + $0x178] sm:$0xff]  ;;  %v540_v21 = vld [vmem:[%s1507_s11 + $0x140] sm:$0xff] }
  0x4c   : > { %577 = vmatpush.msra.mxu0 %v548_v13  ;;  %597 = vmatpush.msra.mxu1 %v549_v14  ;;  %v541_v22 = vld [vmem:[%s1507_s11 + $0x148] sm:$0xff]  ;;  %v542_v23 = vld [vmem:[%s1507_s11 + $0x150] sm:$0xff]  ;;  %v543_v24 = vld [vmem:[%s1507_s11 + $0x158] sm:$0xff] }
  0x4d   : > { %617 = vmatpush.msra.mxu2 %v550_v15  ;;  %637 = vmatpush.msra.mxu3 %v551_v16  ;;  %v536_v25 = vld [vmem:[%s1507_s11 + $0x120] sm:$0xff]  ;;  %v537_v26 = vld [vmem:[%s1507_s11 + $0x128] sm:$0xff]  ;;  %v538_v27 = vld [vmem:[%s1507_s11 + $0x130] sm:$0xff] }
  0x4e   : > { %578 = vmatpush.msra.mxu0 %v544_v17  ;;  %598 = vmatpush.msra.mxu1 %v545_v18  ;;  %v539_v28 = vld [vmem:[%s1507_s11 + $0x138] sm:$0xff]  ;;  %v532_v29 = vld [vmem:[%s1507_s11 + $0x100] sm:$0xff]  ;;  %v533_v30 = vld [vmem:[%s1507_s11 + $0x108] sm:$0xff] }
  0x4f   : > { %618 = vmatpush.msra.mxu2 %v546_v19  ;;  %638 = vmatpush.msra.mxu3 %v547_v20  ;;  %v534_v31 = vld [vmem:[%s1507_s11 + $0x110] sm:$0xff]  ;;  %v535_v32 = vld [vmem:[%s1507_s11 + $0x118] sm:$0xff]  ;;  %v528_v33 = vld [vmem:[%s1507_s11 + $0xe0] sm:$0xff] }
  0x50   : > { %579 = vmatpush.msra.mxu0 %v540_v21  ;;  %599 = vmatpush.msra.mxu1 %v541_v22  ;;  %v529_v34 = vld [vmem:[%s1507_s11 + $0xe8] sm:$0xff]  ;;  %v530_v35 = vld [vmem:[%s1507_s11 + $0xf0] sm:$0xff]  ;;  %v531_v36 = vld [vmem:[%s1507_s11 + $0xf8] sm:$0xff] }
  0x51   : > { %619 = vmatpush.msra.mxu2 %v542_v23  ;;  %639 = vmatpush.msra.mxu3 %v543_v24  ;;  %v524_v37 = vld [vmem:[%s1507_s11 + $0xc0] sm:$0xff]  ;;  %v525_v38 = vld [vmem:[%s1507_s11 + $0xc8] sm:$0xff]  ;;  %v526_v39 = vld [vmem:[%s1507_s11 + $0xd0] sm:$0xff] }
  0x52   : > { %580 = vmatpush.msra.mxu0 %v536_v25  ;;  %600 = vmatpush.msra.mxu1 %v537_v26  ;;  %v527_v40 = vld [vmem:[%s1507_s11 + $0xd8] sm:$0xff]  ;;  %v520_v41 = vld [vmem:[%s1507_s11 + $0xa0] sm:$0xff]  ;;  %v521_v42 = vld [vmem:[%s1507_s11 + $0xa8] sm:$0xff] }
  0x53   : > { %620 = vmatpush.msra.mxu2 %v538_v27  ;;  %640 = vmatpush.msra.mxu3 %v539_v28  ;;  %v522_v43 = vld [vmem:[%s1507_s11 + $0xb0] sm:$0xff]  ;;  %v523_v44 = vld [vmem:[%s1507_s11 + $0xb8] sm:$0xff]  ;;  %v516_v45 = vld [vmem:[%s1507_s11 + $0x80] sm:$0xff] }
  0x54   : > { %581 = vmatpush.msra.mxu0 %v532_v29  ;;  %601 = vmatpush.msra.mxu1 %v533_v30  ;;  %v517_v46 = vld [vmem:[%s1507_s11 + $0x88] sm:$0xff]  ;;  %v518_v47 = vld [vmem:[%s1507_s11 + $0x90] sm:$0xff]  ;;  %v519_v48 = vld [vmem:[%s1507_s11 + $0x98] sm:$0xff] }
  0x55   : > { %621 = vmatpush.msra.mxu2 %v534_v31  ;;  %641 = vmatpush.msra.mxu3 %v535_v32  ;;  %v512_v49 = vld [vmem:[%s1507_s11 + $0x60] sm:$0xff]  ;;  %v513_v50 = vld [vmem:[%s1507_s11 + $0x68] sm:$0xff]  ;;  %v514_v51 = vld [vmem:[%s1507_s11 + $0x70] sm:$0xff] }
  0x56   : > { %582 = vmatpush.msra.mxu0 %v528_v33  ;;  %602 = vmatpush.msra.mxu1 %v529_v34  ;;  %v515_v52 = vld [vmem:[%s1507_s11 + $0x78] sm:$0xff]  ;;  %v508_v53 = vld [vmem:[%s1507_s11 + $0x40] sm:$0xff]  ;;  %v509_v54 = vld [vmem:[%s1507_s11 + $0x48] sm:$0xff] }
  0x57   : > { %622 = vmatpush.msra.mxu2 %v530_v35  ;;  %642 = vmatpush.msra.mxu3 %v531_v36  ;;  %v510_v55 = vld [vmem:[%s1507_s11 + $0x50] sm:$0xff]  ;;  %v511_v56 = vld [vmem:[%s1507_s11 + $0x58] sm:$0xff]  ;;  %v504_v57 = vld [vmem:[%s1507_s11 + $0x20] sm:$0xff] }
  0x58   : > { %583 = vmatpush.msra.mxu0 %v524_v37  ;;  %603 = vmatpush.msra.mxu1 %v525_v38  ;;  %v505_v58 = vld [vmem:[%s1507_s11 + $0x28] sm:$0xff]  ;;  %v506_v59 = vld [vmem:[%s1507_s11 + $0x30] sm:$0xff]  ;;  %v507_v60 = vld [vmem:[%s1507_s11 + $0x38] sm:$0xff] }
  0x59   : > { %623 = vmatpush.msra.mxu2 %v526_v39  ;;  %643 = vmatpush.msra.mxu3 %v527_v40  ;;  %v500_v61 = vld [vmem:[%s1507_s11] sm:$0xff]  ;;  %v501_v62 = vld [vmem:[%s1507_s11 + $0x8] sm:$0xff]  ;;  %v502_v63 = vld [vmem:[%s1507_s11 + $0x10] sm:$0xff] }
  0x5a   : > { %584 = vmatpush.msra.mxu0 %v520_v41  ;;  %604 = vmatpush.msra.mxu1 %v521_v42  ;;  %v503_v0 = vld [vmem:[%s1507_s11 + $0x18] sm:$0xff]  ;;  %v719_v1 = vld [vmem:[%s1515_s5 + $0x1e0] sm:$0xff]  ;;  %v720_v2 = vld [vmem:[%s1515_s5 + $0x1e8] sm:$0xff] }
  0x5b   : > { %624 = vmatpush.msra.mxu2 %v522_v43  ;;  %644 = vmatpush.msra.mxu3 %v523_v44  ;;  %v721_v3 = vld [vmem:[%s1515_s5 + $0x1f0] sm:$0xff]  ;;  %v722_v4 = vld [vmem:[%s1515_s5 + $0x1f8] sm:$0xff]  ;;  %v715_v5 = vld [vmem:[%s1515_s5 + $0x1c0] sm:$0xff] }
  0x5c   : > { %585 = vmatpush.msra.mxu0 %v516_v45  ;;  %605 = vmatpush.msra.mxu1 %v517_v46  ;;  %v716_v6 = vld [vmem:[%s1515_s5 + $0x1c8] sm:$0xff]  ;;  %v717_v7 = vld [vmem:[%s1515_s5 + $0x1d0] sm:$0xff]  ;;  %v718_v8 = vld [vmem:[%s1515_s5 + $0x1d8] sm:$0xff] }
  0x5d   : > { %625 = vmatpush.msra.mxu2 %v518_v47  ;;  %645 = vmatpush.msra.mxu3 %v519_v48  ;;  %v711_v9 = vld [vmem:[%s1515_s5 + $0x1a0] sm:$0xff]  ;;  %v712_v10 = vld [vmem:[%s1515_s5 + $0x1a8] sm:$0xff]  ;;  %v713_v11 = vld [vmem:[%s1515_s5 + $0x1b0] sm:$0xff] }
  0x5e   : > { %586 = vmatpush.msra.mxu0 %v512_v49  ;;  %606 = vmatpush.msra.mxu1 %v513_v50  ;;  %v714_v12 = vld [vmem:[%s1515_s5 + $0x1b8] sm:$0xff]  ;;  %v707_v13 = vld [vmem:[%s1515_s5 + $0x180] sm:$0xff]  ;;  %v708_v14 = vld [vmem:[%s1515_s5 + $0x188] sm:$0xff] }
  0x5f   : > { %626 = vmatpush.msra.mxu2 %v514_v51  ;;  %646 = vmatpush.msra.mxu3 %v515_v52  ;;  %v709_v15 = vld [vmem:[%s1515_s5 + $0x190] sm:$0xff]  ;;  %v710_v16 = vld [vmem:[%s1515_s5 + $0x198] sm:$0xff]  ;;  %v703_v17 = vld [vmem:[%s1515_s5 + $0x160] sm:$0xff] }
  0x60   : > { %587 = vmatpush.msra.mxu0 %v508_v53  ;;  %607 = vmatpush.msra.mxu1 %v509_v54  ;;  %v704_v18 = vld [vmem:[%s1515_s5 + $0x168] sm:$0xff]  ;;  %v705_v19 = vld [vmem:[%s1515_s5 + $0x170] sm:$0xff]  ;;  %v706_v20 = vld [vmem:[%s1515_s5 + $0x178] sm:$0xff] }
  0x61   : > { %627 = vmatpush.msra.mxu2 %v510_v55  ;;  %647 = vmatpush.msra.mxu3 %v511_v56  ;;  %v699_v21 = vld [vmem:[%s1515_s5 + $0x140] sm:$0xff]  ;;  %v700_v22 = vld [vmem:[%s1515_s5 + $0x148] sm:$0xff]  ;;  %v701_v23 = vld [vmem:[%s1515_s5 + $0x150] sm:$0xff] }
  0x62   : > { %588 = vmatpush.msra.mxu0 %v504_v57  ;;  %608 = vmatpush.msra.mxu1 %v505_v58  ;;  %v702_v24 = vld [vmem:[%s1515_s5 + $0x158] sm:$0xff]  ;;  %v695_v25 = vld [vmem:[%s1515_s5 + $0x120] sm:$0xff]  ;;  %v696_v26 = vld [vmem:[%s1515_s5 + $0x128] sm:$0xff] }
  0x63   : > { %628 = vmatpush.msra.mxu2 %v506_v59  ;;  %648 = vmatpush.msra.mxu3 %v507_v60  ;;  %v697_v27 = vld [vmem:[%s1515_s5 + $0x130] sm:$0xff]  ;;  %v698_v28 = vld [vmem:[%s1515_s5 + $0x138] sm:$0xff]  ;;  %v691_v29 = vld [vmem:[%s1515_s5 + $0x100] sm:$0xff] }
  0x64   : > { %589 = vmatpush.msra.mxu0 %v500_v61  ;;  %609 = vmatpush.msra.mxu1 %v501_v62  ;;  %v692_v30 = vld [vmem:[%s1515_s5 + $0x108] sm:$0xff]  ;;  %v693_v31 = vld [vmem:[%s1515_s5 + $0x110] sm:$0xff]  ;;  %v694_v32 = vld [vmem:[%s1515_s5 + $0x118] sm:$0xff] }
  0x65   : > { %629 = vmatpush.msra.mxu2 %v502_v63  ;;  %649 = vmatpush.msra.mxu3 %v503_v0  ;;  %v687_v33 = vld [vmem:[%s1515_s5 + $0xe0] sm:$0xff]  ;;  %v688_v34 = vld [vmem:[%s1515_s5 + $0xe8] sm:$0xff]  ;;  %v689_v35 = vld [vmem:[%s1515_s5 + $0xf0] sm:$0xff] }
  0x66   : > { %733 = vmatpush.msrb.mxu0 %v719_v1  ;;  %753 = vmatpush.msrb.mxu1 %v720_v2  ;;  %v690_v36 = vld [vmem:[%s1515_s5 + $0xf8] sm:$0xff]  ;;  %v683_v37 = vld [vmem:[%s1515_s5 + $0xc0] sm:$0xff]  ;;  %v684_v38 = vld [vmem:[%s1515_s5 + $0xc8] sm:$0xff] }
  0x67   : > { %773 = vmatpush.msrb.mxu2 %v721_v3  ;;  %793 = vmatpush.msrb.mxu3 %v722_v4  ;;  %v685_v39 = vld [vmem:[%s1515_s5 + $0xd0] sm:$0xff]  ;;  %v686_v40 = vld [vmem:[%s1515_s5 + $0xd8] sm:$0xff]  ;;  %v679_v41 = vld [vmem:[%s1515_s5 + $0xa0] sm:$0xff] }
  0x68   : > { %734 = vmatpush.msrb.mxu0 %v715_v5  ;;  %754 = vmatpush.msrb.mxu1 %v716_v6  ;;  %v680_v42 = vld [vmem:[%s1515_s5 + $0xa8] sm:$0xff]  ;;  %v681_v43 = vld [vmem:[%s1515_s5 + $0xb0] sm:$0xff]  ;;  %v682_v44 = vld [vmem:[%s1515_s5 + $0xb8] sm:$0xff] }
  0x69   : > { %774 = vmatpush.msrb.mxu2 %v717_v7  ;;  %794 = vmatpush.msrb.mxu3 %v718_v8  ;;  %v675_v45 = vld [vmem:[%s1515_s5 + $0x80] sm:$0xff]  ;;  %v676_v46 = vld [vmem:[%s1515_s5 + $0x88] sm:$0xff]  ;;  %v677_v47 = vld [vmem:[%s1515_s5 + $0x90] sm:$0xff] }
  0x6a   : > { %735 = vmatpush.msrb.mxu0 %v711_v9  ;;  %755 = vmatpush.msrb.mxu1 %v712_v10  ;;  %v678_v48 = vld [vmem:[%s1515_s5 + $0x98] sm:$0xff]  ;;  %v671_v50 = vld [vmem:[%s1515_s5 + $0x60] sm:$0xff]  ;;  %v672_v51 = vld [vmem:[%s1515_s5 + $0x68] sm:$0xff] }
  0x6b   : > { %775 = vmatpush.msrb.mxu2 %v713_v11  ;;  %795 = vmatpush.msrb.mxu3 %v714_v12  ;;  %v499_v49 = vld [vmem:[%s472_s25] sm:$0xff]  ;;  %v673_v52 = vld [vmem:[%s1515_s5 + $0x70] sm:$0xff]  ;;  %v667_v54 = vld [vmem:[%s1515_s5 + $0x40] sm:$0xff] }
  0x6c   : > { %736 = vmatpush.msrb.mxu0 %v707_v13  ;;  %756 = vmatpush.msrb.mxu1 %v708_v14  ;;  %v674_v53 = vld [vmem:[%s1515_s5 + $0x78] sm:$0xff]  ;;  %v668_v55 = vld [vmem:[%s1515_s5 + $0x48] sm:$0xff]  ;;  %v669_v56 = vld [vmem:[%s1515_s5 + $0x50] sm:$0xff] }
  0x6d   : > { %776 = vmatpush.msrb.mxu2 %v709_v15  ;;  %796 = vmatpush.msrb.mxu3 %v710_v16  ;;  %v670_v57 = vld [vmem:[%s1515_s5 + $0x58] sm:$0xff]  ;;  %v663_v58 = vld [vmem:[%s1515_s5 + $0x20] sm:$0xff]  ;;  %v664_v59 = vld [vmem:[%s1515_s5 + $0x28] sm:$0xff] }
  0x6e   : > { %737 = vmatpush.msrb.mxu0 %v703_v17  ;;  %757 = vmatpush.msrb.mxu1 %v704_v18  ;;  %v665_v60 = vld [vmem:[%s1515_s5 + $0x30] sm:$0xff]  ;;  %v666_v61 = vld [vmem:[%s1515_s5 + $0x38] sm:$0xff]  ;;  %v659_v62 = vld [vmem:[%s1515_s5] sm:$0xff] }
  0x6f   : > { %777 = vmatpush.msrb.mxu2 %v705_v19  ;;  %797 = vmatpush.msrb.mxu3 %v706_v20  ;;  %v660_v63 = vld [vmem:[%s1515_s5 + $0x8] sm:$0xff]  ;;  %v661_v0 = vld [vmem:[%s1515_s5 + $0x10] sm:$0xff]  ;;  %v662_v1 = vld [vmem:[%s1515_s5 + $0x18] sm:$0xff] }
  0x70   : > { %738 = vmatpush.msrb.mxu0 %v699_v21  ;;  %758 = vmatpush.msrb.mxu1 %v700_v22  ;;  %v658_v2 = vld [vmem:[%s476_s24] sm:$0xff]  ;;  %v840_v5 = vld [vmem:[%s1548_s18 + $0x70] sm:$0xff]  ;;  %v839_v7 = vld [vmem:[%s1548_s18 + $0x68] sm:$0xff] }
  0x71   : > { %778 = vmatpush.msrb.mxu2 %v701_v23  ;;  %798 = vmatpush.msrb.mxu3 %v702_v24  ;;  %v841_v3 = vld [vmem:[%s1548_s18 + $0x78] sm:$0xff]  ;;  %v856_v6 = vld [vmem:[%s1548_s18 + $0xf0] sm:$0xff]  ;;  %v855_v8 = vld [vmem:[%s1548_s18 + $0xe8] sm:$0xff] }
  0x72   : > { %739 = vmatpush.msrb.mxu0 %v695_v25  ;;  %759 = vmatpush.msrb.mxu1 %v696_v26  ;;  %v857_v4 = vld [vmem:[%s1548_s18 + $0xf8] sm:$0xff]  ;;  %v838_v9 = vld [vmem:[%s1548_s18 + $0x60] sm:$0xff]  ;;  %v836_v11 = vld [vmem:[%s1548_s18 + $0x50] sm:$0xff] }
  0x73   : > { %779 = vmatpush.msrb.mxu2 %v697_v27  ;;  %799 = vmatpush.msrb.mxu3 %v698_v28  ;;  %v837_v10 = vld [vmem:[%s1548_s18 + $0x58] sm:$0xff]  ;;  %v835_v12 = vld [vmem:[%s1548_s18 + $0x48] sm:$0xff]  ;;  %v854_v13 = vld [vmem:[%s1548_s18 + $0xe0] sm:$0xff] }
  0x74   : > { %740 = vmatpush.msrb.mxu0 %v691_v29  ;;  %760 = vmatpush.msrb.mxu1 %v692_v30  ;;  %v834_v14 = vld [vmem:[%s1548_s18 + $0x40] sm:$0xff]  ;;  %v853_v15 = vld [vmem:[%s1548_s18 + $0xd8] sm:$0xff]  ;;  %v852_v17 = vld [vmem:[%s1548_s18 + $0xd0] sm:$0xff] }
  0x75   : > { %780 = vmatpush.msrb.mxu2 %v693_v31  ;;  %800 = vmatpush.msrb.mxu3 %v694_v32  ;;  %v833_v16 = vld [vmem:[%s1548_s18 + $0x38] sm:$0xff]  ;;  %v832_v18 = vld [vmem:[%s1548_s18 + $0x30] sm:$0xff]  ;;  %v851_v19 = vld [vmem:[%s1548_s18 + $0xc8] sm:$0xff] }
  0x76   : > { %741 = vmatpush.msrb.mxu0 %v687_v33  ;;  %761 = vmatpush.msrb.mxu1 %v688_v34  ;;  %v831_v20 = vld [vmem:[%s1548_s18 + $0x28] sm:$0xff]  ;;  %v850_v21 = vld [vmem:[%s1548_s18 + $0xc0] sm:$0xff]  ;;  %v849_v23 = vld [vmem:[%s1548_s18 + $0xb8] sm:$0xff] }
  0x77   : > { %781 = vmatpush.msrb.mxu2 %v689_v35  ;;  %801 = vmatpush.msrb.mxu3 %v690_v36  ;;  %v830_v22 = vld [vmem:[%s1548_s18 + $0x20] sm:$0xff]  ;;  %v829_v24 = vld [vmem:[%s1548_s18 + $0x18] sm:$0xff]  ;;  %v848_v25 = vld [vmem:[%s1548_s18 + $0xb0] sm:$0xff] }
  0x78   : > { %742 = vmatpush.msrb.mxu0 %v683_v37  ;;  %762 = vmatpush.msrb.mxu1 %v684_v38  ;;  %v828_v26 = vld [vmem:[%s1548_s18 + $0x10] sm:$0xff]  ;;  %v847_v27 = vld [vmem:[%s1548_s18 + $0xa8] sm:$0xff]  ;;  %v846_v29 = vld [vmem:[%s1548_s18 + $0xa0] sm:$0xff] }
  0x79   : > { %782 = vmatpush.msrb.mxu2 %v685_v39  ;;  %802 = vmatpush.msrb.mxu3 %v686_v40  ;;  %v827_v28 = vld [vmem:[%s1548_s18 + $0x8] sm:$0xff]  ;;  %v826_v30 = vld [vmem:[%s1548_s18] sm:$0xff]  ;;  %v845_v31 = vld [vmem:[%s1548_s18 + $0x98] sm:$0xff] }
  0x7a   : > { %743 = vmatpush.msrb.mxu0 %v679_v41  ;;  %763 = vmatpush.msrb.mxu1 %v680_v42  ;;  %v844_v32 = vld [vmem:[%s1548_s18 + $0x90] sm:$0xff]  ;;  %v843_v33 = vld [vmem:[%s1548_s18 + $0x88] sm:$0xff]  ;;  %v842_v34 = vld [vmem:[%s1548_s18 + $0x80] sm:$0xff] }
  0x7b   : > { %783 = vmatpush.msrb.mxu2 %v681_v43  ;;  %803 = vmatpush.msrb.mxu3 %v682_v44  ;;  %v564_v37 = vld [vmem:[%s481_s7] sm:$0xf] }
  0x7c   : > { %744 = vmatpush.msrb.mxu0 %v675_v45  ;;  %764 = vmatpush.msrb.mxu1 %v676_v46  ;;  %v723_v38 = vld [vmem:[%s487_s1] sm:$0xf]  ;;  %v566_v39 = vperm.slane %v564_v37, 0  ;;  %v567_v40 = vperm.slane %v564_v37, 1 }
  0x7d   : > { %784 = vmatpush.msrb.mxu2 %v677_v47  ;;  %804 = vmatpush.msrb.mxu3 %v678_v48  ;;  %v725_v43 = vperm.slane %v723_v38, 0  ;;  %v726_v44 = vperm.slane %v723_v38, 1 }
  0x7e   : > { %590 = vmatmul.f32.vlgmr.msra.gmra.mxu0 %v499_v49  ;;  %610 = vmatmul.f32.vlgmr.msra.gmra.mxu1 %v499_v49 }
  0x7f   : > { %630 = vmatmul.f32.vlgmr.msra.gmra.mxu2 %v499_v49  ;;  %650 = vmatmul.f32.vlgmr.msra.gmra.mxu3 %v499_v49 }
  0x80   : > { %745 = vmatpush.msrb.mxu0 %v671_v50  ;;  %765 = vmatpush.msrb.mxu1 %v672_v51  ;;  %v568_v51 = vperm.slane %v564_v37, 2 }
  0x81   : > { %785 = vmatpush.msrb.mxu2 %v673_v52  ;;  %805 = vmatpush.msrb.mxu3 %v674_v53  ;;  %v569_v52 = vperm.slane %v564_v37, 3 }
  0x82   : > { %746 = vmatpush.msrb.mxu0 %v667_v54  ;;  %766 = vmatpush.msrb.mxu1 %v668_v55 }
  0x83   : > { %786 = vmatpush.msrb.mxu2 %v669_v56  ;;  %806 = vmatpush.msrb.mxu3 %v670_v57  ;;  %v727_v57 = vperm.slane %v723_v38, 2 }
  0x84   : > { %747 = vmatpush.msrb.mxu0 %v663_v58  ;;  %767 = vmatpush.msrb.mxu1 %v664_v59  ;;  %v728_v58 = vperm.slane %v723_v38, 3 }
  0x85   : > { %787 = vmatpush.msrb.mxu2 %v665_v60  ;;  %807 = vmatpush.msrb.mxu3 %v666_v61 }
  0x86   : > { %748 = vmatpush.msrb.mxu0 %v659_v62  ;;  %768 = vmatpush.msrb.mxu1 %v660_v63 }
  0x87   : > { %788 = vmatpush.msrb.mxu2 %v661_v0  ;;  %808 = vmatpush.msrb.mxu3 %v662_v1 }
  0x88   : > { %749 = vmatmul.f32.vlgmr.msrb.gmra.mxu0 %v658_v2  ;;  %769 = vmatmul.f32.vlgmr.msrb.gmra.mxu1 %v658_v2 }
  0x89   : > { %789 = vmatmul.f32.vlgmr.msrb.gmra.mxu2 %v658_v2  ;;  %809 = vmatmul.f32.vlgmr.msrb.gmra.mxu3 %v658_v2 }
  0x8a   : > { %878 = vmatpush.msra.mxu1 %v841_v3  ;;  %858 = vmatpush.msra.mxu0 %v857_v4 }
  0x8c   : > { %879 = vmatpush.msra.mxu1 %v840_v5  ;;  %859 = vmatpush.msra.mxu0 %v856_v6 }
  0x8e   : > { %880 = vmatpush.msra.mxu1 %v839_v7  ;;  %860 = vmatpush.msra.mxu0 %v855_v8 }
  0x90   : > { %881 = vmatpush.msra.mxu1 %v838_v9  ;;  %861 = vmatpush.msra.mxu0 %v854_v13 }
  0x92   : > { %882 = vmatpush.msra.mxu1 %v837_v10  ;;  %862 = vmatpush.msra.mxu0 %v853_v15 }
  0x94   : > { %883 = vmatpush.msra.mxu1 %v836_v11  ;;  %863 = vmatpush.msra.mxu0 %v852_v17 }
  0x96   : > { %884 = vmatpush.msra.mxu1 %v835_v12  ;;  %864 = vmatpush.msra.mxu0 %v851_v19 }
  0x98   : > { %885 = vmatpush.msra.mxu1 %v834_v14  ;;  %865 = vmatpush.msra.mxu0 %v850_v21  ;;  %v825_v14 = vld [vmem:[#allocation2] sm:$0xff] }
  0x9a   : > { %886 = vmatpush.msra.mxu1 %v833_v16  ;;  %866 = vmatpush.msra.mxu0 %v849_v23 }
  0x9c   : > { %887 = vmatpush.msra.mxu1 %v832_v18  ;;  %867 = vmatpush.msra.mxu0 %v848_v25 }
  0x9e   : > { %888 = vmatpush.msra.mxu1 %v831_v20  ;;  %868 = vmatpush.msra.mxu0 %v847_v27 }
  0xa0   : > { %889 = vmatpush.msra.mxu1 %v830_v22  ;;  %869 = vmatpush.msra.mxu0 %v846_v29 }
  0xa2   : > { %890 = vmatpush.msra.mxu1 %v829_v24  ;;  %870 = vmatpush.msra.mxu0 %v845_v31 }
  0xa4   : > { %891 = vmatpush.msra.mxu1 %v828_v26  ;;  %871 = vmatpush.msra.mxu0 %v844_v32 }
  0xa6   : > { %892 = vmatpush.msra.mxu1 %v827_v28  ;;  %872 = vmatpush.msra.mxu0 %v843_v33 }
  0xa8   : > { %893 = vmatpush.msra.mxu1 %v826_v30  ;;  %873 = vmatpush.msra.mxu0 %v842_v34 }
  0xfb   : > { %v591_v35 = vpop.f32.mrf.mxu0  ;;  %v611_v36 = vpop.f32.mrf.mxu1 }
  0xfc   : > { %v592_v45 = vadd.f32 %v591_v35, %v566_v39  ;;  %v612_v46 = vadd.f32 %v611_v36, %v567_v40 }
  0xfe   : > { %v654_v53 = vmax.f32 %v592_v45, 0.0  ;;  %v655_v54 = vmax.f32 %v612_v46, 0.0 }
 0x102   : > { %v631_v41 = vpop.f32.mrf.mxu2  ;;  %v651_v42 = vpop.f32.mrf.mxu3 }
 0x103   : > { %v632_v61 = vadd.f32 %v631_v41, %v568_v51  ;;  %v652_v62 = vadd.f32 %v651_v42, %v569_v52 }
 0x105   : > { %v750_v47 = vpop.f32.mrf.mxu0  ;;  %v770_v48 = vpop.f32.mrf.mxu1  ;;  %v656_v4 = vmax.f32 %v632_v61, 0.0  ;;  %v657_v5 = vmax.f32 %v652_v62, 0.0 }
 0x106   : > { %v751_v49 = vadd.f32 %v750_v47, %v725_v43  ;;  %v771_v50 = vadd.f32 %v770_v48, %v726_v44 }
 0x108   : > { %v813_v55 = vmax.f32 %v751_v49, 0.0  ;;  %v814_v56 = vmax.f32 %v771_v50, 0.0 }
 0x10a   : > { %v817_v59 = vmul.f32 %v813_v55, %v654_v53  ;;  %v820_v60 = vmul.f32 %v814_v56, %v655_v54 }
 0x10c   : > { %v823_v63 = vadd.f32 %v820_v60, %v817_v59  ;;  %v790_v0 = vpop.f32.mrf.mxu2  ;;  %v810_v1 = vpop.f32.mrf.mxu3 }
 0x10d   : > { %v791_v2 = vadd.f32 %v790_v0, %v727_v57  ;;  %v811_v3 = vadd.f32 %v810_v1, %v728_v58 }
 0x10e   : > { %894 = vmatmul.f32.vlgmr.msra.gmra.mxu1 %v823_v63 }
 0x10f   : > { %v815_v6 = vmax.f32 %v791_v2, 0.0  ;;  %v816_v7 = vmax.f32 %v811_v3, 0.0 }
 0x111   : > { %v818_v8 = vmul.f32 %v815_v6, %v656_v4  ;;  %v821_v9 = vmul.f32 %v816_v7, %v657_v5 }
 0x113   : > { %v819_v10 = vmul.f32 %v818_v8, %v817_v59  ;;  %v822_v11 = vmul.f32 %v821_v9, %v820_v60 }
 0x115   : > { %v824_v12 = vadd.f32 %v822_v11, %v819_v10 }
 0x117   : > { %874 = vmatmul.f32.vlgmr.msra.gmra.mxu0 %v824_v12 }
 0x18b   : > { %v895_v13 = vpop.f32.mrf.mxu1 }
 0x194   : > { %v875_v15 = vpop.f32.mrf.mxu0 }
 0x195   : > { %v896_v16 = vadd.f32 %v895_v13, %v875_v15  ;;  %903 = sbr.rel (%p1096_p3) target bundleno = 422 (0x1a6), region = 72 }
 0x197   : > { %v898_v17 = vadd.f32 %v896_v16, %v825_v14 }
 0x199   : > { %899 = vst [vmem:[#allocation2] sm:$0xff] %v898_v17 }
 0x19a   : > { %v1189_v19 = vld [vmem:[%s1803_s21] ss:$0 sm:$0xff] }
 0x1a0   : > { %v904_v18 = vld [vmem:[#allocation2] sm:$0xff] }
 0x1a1   : > { %v909_v20 = vadd.f32 %v1189_v19, %v904_v18 }
 0x1a3   : > { %v910_v21 = vmax.f32 %v909_v20, 0.0 }
 0x1a5   : > { %911 = vst [vmem:[%s493_s9] sm:$0xff] %v910_v21 }
 0x1a6 PF: > { %s24_s12 = sadd.s32 1, %s1350_s12   ;;  %s1805_s30 = sld [smem:[#allocation10_spill]] }
 0x1a7   : > { %p21_p4 = scmp.ge.s32.totalorder %s24_s12, 6   ;;  %s1806_s29 = sld [smem:[#allocation14_spill]] }
 0x1a8   : > { %s1807_s9 = sld [smem:[#allocation11_spill]]  ;;  %s1810_s27 = smov %s1326_s28 }
 0x1a9   : > { %s1808_s0 = sld [smem:[#allocation12_spill]] }
 0x1aa   : > { %s1809_s11 = sld [smem:[#allocation13_spill]] }
 0x1ab   :  { %23 = sbr.rel (!%p21_p4) target bundleno = 15 (0xf), region = 136 }
 0x1ac   : > { %s1811_s28 = smov %s1805_s30  ;;  %s1812_s30 = smov %s1342_s10 }
 0x1af   : > { %s1813_s10 = smov %s1808_s0 }
 0x1b0   :  { %931 = vsyncpa [#allocation4], 1 }
 0x1b1   :  { %933 = vsyncpa [#allocation4 + $0x1], 1 }
 0x1b2   :  { %934 = vsyncpa [#allocation6], 1 }
 0x1b3   :  { %936 = vsyncpa [#allocation6 + $0x1], 1 }

</bundles_post_ra>
